<compile_context>
chip_gen: v5e
topology: v5e:2x2
jax: 0.10.0
libtpu: 0.0.40
codegen_flags: <defaults>
</compile_context>

<pallas_src>
import functools

import jax
import jax.numpy as jnp
from jax.experimental import pallas as pl
from jax.experimental.pallas import tpu as pltpu


def _round_up(x: int, m: int) -> int:
    return ((x + m - 1) // m) * m


def linear_kernel(x_ref, w_ref, b_ref, o_ref):
    """One (tm, tn) output tile; K is reduced over grid axis 2 (innermost)."""
    k = pl.program_id(2)

    @pl.when(k == 0)
    def _init():
        # Fold the bias into the accumulator init (no epilogue add needed).
        o_ref[...] = jnp.broadcast_to(b_ref[...], o_ref.shape)

    # (tm, tk) @ (tk, tn) on the MXU; f32 accumulation directly into the
    # VMEM-resident output tile (output block index is constant along k).
    o_ref[...] += jnp.dot(x_ref[...], w_ref[...],
                          preferred_element_type=jnp.float32)


@functools.partial(
    jax.jit, static_argnames=("n_out", "tm", "tn", "tk", "compute_dtype"))
def _linear_pallas(x, w_packed, b_packed, *, n_out, tm, tn, tk, compute_dtype):
    """y = x @ W.T + b with W pre-packed as (Kp, Np) in compute_dtype."""
    M, K = x.shape
    Kp, Np = w_packed.shape

    # Clamp the M tile to the (padded) problem, keeping sublane alignment
    # (bf16 packs two rows per sublane -> align to 16).
    m_align = 16 if compute_dtype == jnp.bfloat16 else 8
    tm_eff = min(tm, _round_up(M, m_align))
    Mp = _round_up(M, tm_eff)

    x_c = x.astype(compute_dtype)
    pad_m, pad_k = Mp - M, Kp - K
    if pad_m or pad_k:  # no-op for production shapes that divide the tiles
        x_c = jnp.pad(x_c, ((0, pad_m), (0, pad_k)))

    grid = (Mp // tm_eff, Np // tn, Kp // tk)

    itemsize = jnp.dtype(compute_dtype).itemsize
    # Double-buffered input tiles + (double-buffered) f32 output tile + margin.
    vmem_bytes = (2 * (tm_eff * tk + tk * tn) * itemsize
                  + 2 * tm_eff * tn * 4 + (1 << 20))
    vmem_limit = min(max(vmem_bytes, 16 << 20), 64 << 20)

    cost = pl.CostEstimate(
        flops=2 * M * n_out * K,
        transcendentals=0,
        # x is streamed once per N-tile, W once per M-tile, output written once.
        bytes_accessed=(itemsize * (M * K * grid[1] + K * n_out * grid[0])
                        + 4 * (M * n_out + n_out)),
    )

    out_p = pl.pallas_call(
        linear_kernel,
        out_shape=jax.ShapeDtypeStruct((Mp, Np), jnp.float32),
        grid=grid,
        in_specs=[
            pl.BlockSpec((tm_eff, tk), lambda i, j, k: (i, k)),  # x tile
            pl.BlockSpec((tk, tn), lambda i, j, k: (k, j)),      # W (K,N) tile
            pl.BlockSpec((1, tn), lambda i, j, k: (0, j)),       # bias tile
        ],
        out_specs=pl.BlockSpec((tm_eff, tn), lambda i, j, k: (i, j)),
        compiler_params=pltpu.CompilerParams(
            dimension_semantics=("parallel", "parallel", "arbitrary"),
            vmem_limit_bytes=vmem_limit,
        ),
        cost_estimate=cost,
    )(x_c, w_packed, b_packed)

    if Mp != M or Np != n_out:
        out_p = out_p[:M, :n_out]
    return out_p


def make_linear_fn(weight, bias, *, tm=512, tn=512, tk=None,
                   compute_dtype=jnp.bfloat16):
    """Pack nn.Linear params once (at load time) and return a callable x -> y.

    weight: (out_features, in_features) float32  (PyTorch layout)
    bias:   (out_features,)             float32
    """
    N, K = weight.shape
    assert bias.shape == (N,), "bias / weight shape mismatch"

    if tk is None:
        tk = 1024 if compute_dtype == jnp.bfloat16 else 512
    tn = min(tn, _round_up(N, 128))
    tk = min(tk, _round_up(K, 128))
    Np = _round_up(N, tn)
    Kp = _round_up(K, tk)

    # One-time pad + transpose into MXU-native (K, N) layout + dtype cast.
    # The per-call hot path never touches the full weight again.
    w_packed = jnp.transpose(
        jnp.pad(weight, ((0, Np - N), (0, Kp - K)))).astype(compute_dtype)
    b_packed = jnp.pad(bias, (0, Np - N)).reshape(1, Np).astype(jnp.float32)
    w_packed = jax.device_put(w_packed)
    b_packed = jax.device_put(b_packed)

    def apply_fn(x):
        return _linear_pallas(x, w_packed, b_packed, n_out=N,
                              tm=tm, tn=tn, tk=tk, compute_dtype=compute_dtype)

    return apply_fn


if __name__ == "__main__":
    # Small shapes consistent with nn.Linear(in_features, out_features).
    # NOTE: at this size the op is launch-overhead dominated; the tiling /
    # dtype choices target production shapes (M, N, K in the hundreds+).
    batch, in_features, out_features = 8, 32, 16

    key = jax.random.PRNGKey(0)
    kx, kw, kb = jax.random.split(key, 3)

    x = jax.random.normal(kx, (batch, in_features), dtype=jnp.float32)
    bound = 1.0 / float(in_features) ** 0.5  # PyTorch nn.Linear init bound
    weight = jax.random.uniform(kw, (out_features, in_features),
                                minval=-bound, maxval=bound, dtype=jnp.float32)
    bias = jax.random.uniform(kb, (out_features,),
                              minval=-bound, maxval=bound, dtype=jnp.float32)

    # Default fast path: bf16 MXU operands, f32 accumulation.
    linear_bf16 = make_linear_fn(weight, bias)
    y_bf16 = jax.block_until_ready(linear_bf16(x))

    # f32 operand path for a bit-tight reference check.
    linear_f32 = make_linear_fn(weight, bias, compute_dtype=jnp.float32)
    y_f32 = jax.block_until_ready(linear_f32(x))

    # References.
    y_ref = x @ weight.T + bias
    x_r = x.astype(jnp.bfloat16).astype(jnp.float32)
    w_r = weight.astype(jnp.bfloat16).astype(jnp.float32)
    y_ref_bf16 = x_r @ w_r.T + bias  # same operand rounding as the bf16 kernel

    assert y_f32.shape == (batch, out_features)
    assert y_bf16.shape == (batch, out_features)
    assert jnp.allclose(y_f32, y_ref, atol=1e-5, rtol=1e-5), "f32 mismatch"
    assert jnp.allclose(y_bf16, y_ref_bf16, atol=1e-3, rtol=1e-3), "bf16 mismatch"
    assert jnp.allclose(y_bf16, y_ref, atol=5e-2, rtol=5e-2), "bf16 drift vs f32"

    print("KERNEL_OK")
</pallas_src>

<mosaic_0001>
module attributes {stable_mosaic.version = 11 : i64} {
  func.func @linear_kernel(%arg0: i32, %arg1: i32, %arg2: i32, %arg3: memref<16x128xbf16, #tpu.memory_space<vmem>>, %arg4: memref<128x128xbf16, #tpu.memory_space<vmem>>, %arg5: memref<1x128xf32, #tpu.memory_space<vmem>>, %arg6: memref<16x128xf32, #tpu.memory_space<vmem>>) attributes {dimension_semantics = [#tpu.dimension_semantics<parallel>, #tpu.dimension_semantics<parallel>, #tpu.dimension_semantics<arbitrary>], iteration_bounds = array<i64: 1, 1, 1>, scalar_prefetch = 0 : i64, scratch_operands = 0 : i64, tpu.core_type = #tpu.core_type<tc>, window_params = [{transform_indices = @transform_0, window_bounds = array<i64: 16, 128>}, {transform_indices = @transform_1, window_bounds = array<i64: 128, 128>}, {transform_indices = @transform_2, window_bounds = array<i64: 1, 128>}, {transform_indices = @transform_3, window_bounds = array<i64: 16, 128>}]} {
    %c0_i32 = arith.constant 0 : i32
    %0 = arith.cmpi eq, %arg2, %c0_i32 : i32
    %1 = arith.extui %0 : i1 to i32
    %c0_i32_0 = arith.constant 0 : i32
    %2 = arith.cmpi ne, %1, %c0_i32_0 : i32
    scf.if %2 {
      %c0_8 = arith.constant 0 : index
      %c0_9 = arith.constant 0 : index
      %9 = vector.load %arg5[%c0_8, %c0_9] : memref<1x128xf32, #tpu.memory_space<vmem>>, vector<1x128xf32>
      %10 = vector.shape_cast %9 : vector<1x128xf32> to vector<1x128xf32>
      %11 = vector.broadcast %10 : vector<1x128xf32> to vector<16x128xf32>
      %c0_10 = arith.constant 0 : index
      %c0_11 = arith.constant 0 : index
      %12 = vector.load %arg6[%c0_10, %c0_11] : memref<16x128xf32, #tpu.memory_space<vmem>>, vector<16x128xf32>
      tpu.vector_store %arg6[%c0_10, %c0_11], %11 {strides = array<i32>} : memref<16x128xf32, #tpu.memory_space<vmem>>, vector<16x128xf32>,
    } else {
    }
    %c0 = arith.constant 0 : index
    %c0_1 = arith.constant 0 : index
    %3 = vector.load %arg6[%c0, %c0_1] : memref<16x128xf32, #tpu.memory_space<vmem>>, vector<16x128xf32>
    %c0_2 = arith.constant 0 : index
    %c0_3 = arith.constant 0 : index
    %4 = vector.load %arg3[%c0_2, %c0_3] : memref<16x128xbf16, #tpu.memory_space<vmem>>, vector<16x128xbf16>
    %c0_4 = arith.constant 0 : index
    %c0_5 = arith.constant 0 : index
    %5 = vector.load %arg4[%c0_4, %c0_5] : memref<128x128xbf16, #tpu.memory_space<vmem>>, vector<128x128xbf16>
    %cst = arith.constant dense<0.000000e+00> : vector<16x128xf32>
    %6 = tpu.matmul %4, %5, %cst {dimension_numbers = #tpu.dot_dimension_numbers<[1], [0], [0], [1], [0, 0, 1, 1], [], []>} : vector<16x128xbf16>, vector<128x128xbf16>, vector<16x128xf32> -> vector<16x128xf32>
    %7 = arith.addf %3, %6 : vector<16x128xf32>
    %c0_6 = arith.constant 0 : index
    %c0_7 = arith.constant 0 : index
    %8 = vector.load %arg6[%c0_6, %c0_7] : memref<16x128xf32, #tpu.memory_space<vmem>>, vector<16x128xf32>
    tpu.vector_store %arg6[%c0_6, %c0_7], %7 {strides = array<i32>} : memref<16x128xf32, #tpu.memory_space<vmem>>, vector<16x128xf32>,
    return
  }
  func.func @transform_0(%arg0: i32, %arg1: i32, %arg2: i32) -> (i32, i32) {
    %c0_i32 = arith.constant 0 : i32
    return %arg0, %arg2 : i32, i32
  }
  func.func @transform_1(%arg0: i32, %arg1: i32, %arg2: i32) -> (i32, i32) {
    %c0_i32 = arith.constant 0 : i32
    return %arg2, %arg1 : i32, i32
  }
  func.func @transform_2(%arg0: i32, %arg1: i32, %arg2: i32) -> (i32, i32) {
    %c0_i32 = arith.constant 0 : i32
    %c0_i32_0 = arith.constant 0 : i32
    return %c0_i32, %arg1 : i32, i32
  }
  func.func @transform_3(%arg0: i32, %arg1: i32, %arg2: i32) -> (i32, i32) {
    %c0_i32 = arith.constant 0 : i32
    return %arg0, %arg1 : i32, i32
  }
}

</mosaic_0001>

<bundles_post_ra>
// kernel: _linear_pallas.1
= control target key start
LH: loop header
LB: loop body
LE: loop exit
PB: predicated region body
PF: predicated region fallthrough
CT: control target
= control target key end

     0   :  { %8 = vsyncpa [#allocation3], 0  ;;  %s212_s15 = smov [#allocation2]   ;;  %s213_s17 = smov 64   ;;  %s250_s0 = inlined_call_operand.vmem [shape: bf16[16,128], index: 0, kind: input, shape index: {}]   ;;  %s251_s1 = inlined_call_operand.hbm [shape: bf16[128,128], index: 1, kind: input, shape index: {}]   ;;  %s252_s2 = inlined_call_operand.vmem [shape: f32[1,128], index: 2, kind: input, shape index: {}]   ;;  %s253_s3 = inlined_call_operand.vmem [shape: f32[16,128], index: 3, kind: output, shape index: {}]  }
   0x1   :  { %s15_s14 = sshll.u32 %s251_s1, 4  ;;  %s17_s16 = sshll.u32 %s212_s15, 4  ;;  %s16_s14 = int_to_ptr.hbm [resolvable:$true] %s15_s14  ;;  %s18_s16 = int_to_ptr.vmem [resolvable:$true] %s17_s16 }
   0x2   :  { %s214_s18 = smov 4  }
   0x3   :  { %23 = dma.hbm_to_vmem [thread:$0]  %s16_s14, 1024, %s18_s16, [#allocation3], %s213_s17, %s213_s17, %s214_s18  }
   0x4   :  { %210 = dma.done.wait [#allocation3], 1024  }
   0x5   :  { %211 = vsyncadd [#allocation3], 4294966272  ;;  %v181_v0 = vld [vmem:[#allocation2 + $0x38] sm:$0xff]  ;;  %v180_v1 = vld [vmem:[#allocation2 + $0x30] sm:$0xff] }
   0x6   :  { %114 = vmatpush.bf16.msra.mxu0 %v181_v0  ;;  %v179_v2 = vld [vmem:[#allocation2 + $0x28] sm:$0xff]  ;;  %v178_v3 = vld [vmem:[#allocation2 + $0x20] sm:$0xff]  ;;  %v177_v4 = vld [vmem:[#allocation2 + $0x18] sm:$0xff] }
   0x7   :  { %v176_v5 = vld [vmem:[#allocation2 + $0x10] sm:$0xff]  ;;  %v175_v6 = vld [vmem:[#allocation2 + $0x8] sm:$0xff]  ;;  %v174_v7 = vld [vmem:[#allocation2] sm:$0xff] }
   0x8   :  { %v173_v8 = vld [vmem:[%s250_s0] sm:$0xff] }
   0x9   :  { %v185_v9 = vld [vmem:[%s252_s2] ss:$0 sm:$0xff] }
   0xa   :  { %115 = vmatpush.bf16.msra.mxu0 %v180_v1 }
   0xe   :  { %116 = vmatpush.bf16.msra.mxu0 %v179_v2 }
  0x12   :  { %117 = vmatpush.bf16.msra.mxu0 %v178_v3 }
  0x16   :  { %118 = vmatpush.bf16.msra.mxu0 %v177_v4 }
  0x1a   :  { %119 = vmatpush.bf16.msra.mxu0 %v176_v5 }
  0x1e   :  { %120 = vmatpush.bf16.msra.mxu0 %v175_v6 }
  0x22   :  { %121 = vmatpush.bf16.msra.mxu0 %v174_v7 }
  0x25   :  { %122 = vmatmul.bf16.vlgmr.msra.gmra.mxu0 %v173_v8 }
  0xa2   :  { %v123_v10 = vpop.f32.mrf.mxu0 }
  0xa3   :  { %v128_v11 = vadd.f32 %v185_v9, %v123_v10 }
  0xa5   :  { %130 = vst [vmem:[%s253_s3] sm:$0xff] %v128_v11 }
  0xaa   :  { %v125_v12 = vpop.f32.mrf.mxu0 }
  0xab   :  { %v129_v13 = vadd.f32 %v185_v9, %v125_v12 }
  0xad   :  { %131 = vst [vmem:[%s253_s3 + $0x8] sm:$0xff] %v129_v13 }
  0xae   :  { %136 = vsyncpa [#allocation3], 1 }

</bundles_post_ra>
